<compile_context>
chip_gen: v6e
topology: v6e:2x2x1
jax: 0.10.0
libtpu: 0.0.40
codegen_flags: <defaults>
</compile_context>

<pallas_src>
import jax
import jax.numpy as jnp
import numpy as np
from jax.experimental import pallas as pl
from jax.experimental.pallas import tpu as pltpu


def _identity_kernel(x_ref, o_ref):
    # Pure pass-through: copy the VMEM tile.
    o_ref[...] = x_ref[...]


# ~2 MiB per block: grid-step overhead becomes negligible while
# (2 in + 2 out) double-buffered blocks stay inside every generation's
# default scoped-VMEM limit (v5e 16 MiB, v6e/v7x 32 MiB).
_TILE_BYTES = 2 * 1024 * 1024

# Lane-dense column widths (largest first) -> wide, unmasked vst stores.
_COL_CHOICES = (8192, 4096, 2048, 1024, 512, 256, 128)

# Sub-32-bit dtypes pack along sublanes; keep row tiles dense per dtype.
_SUBLANE_PACK = {4: 8, 2: 16, 1: 32}


@jax.jit
def identity(x):
    """Pallas implementation of `Identity.forward(x) -> x`.

    Note: simply returning `x` is the truly free implementation; this keeps a
    pallas_call (a buffer-aliased copy) so the op exists as a TPU kernel.
    """
    n = x.size
    itemsize = jnp.dtype(x.dtype).itemsize
    total_bytes = n * itemsize

    if n % 128 == 0 and n > 0:
        # Lane-dense 2D view (contiguous reshape -> bitcast, no HBM copy).
        cols = next(c for c in _COL_CHOICES if n % c == 0)
        rows = n // cols
        x2d = x.reshape(rows, cols)

        if total_bytes <= _TILE_BYTES:
            # Small: one whole-array block, no grid.
            out2d = pl.pallas_call(
                _identity_kernel,
                out_shape=jax.ShapeDtypeStruct((rows, cols), x.dtype),
                input_output_aliases={0: 0},
            )(x2d)
        else:
            pack = _SUBLANE_PACK.get(itemsize, 8)
            rows_per_tile = max(
                pack, (_TILE_BYTES // (cols * itemsize)) // pack * pack)
            rows_per_tile = min(rows_per_tile, rows)
            out2d = pl.pallas_call(
                _identity_kernel,
                out_shape=jax.ShapeDtypeStruct((rows, cols), x.dtype),
                grid_spec=pltpu.PrefetchScalarGridSpec(
                    num_scalar_prefetch=0,
                    grid=(pl.cdiv(rows, rows_per_tile),),
                    in_specs=[pl.BlockSpec((rows_per_tile, cols),
                                           lambda i: (i, 0))],
                    out_specs=pl.BlockSpec((rows_per_tile, cols),
                                           lambda i: (i, 0)),
                ),
                input_output_aliases={0: 0},
                compiler_params=pltpu.CompilerParams(
                    dimension_semantics=("parallel",)),
            )(x2d)
        return out2d.reshape(x.shape)

    # Sizes that don't map cleanly onto 128 lanes: single whole-array block
    # (block_shape == full array dims waives the (8,128) divisibility rule).
    return pl.pallas_call(
        _identity_kernel,
        out_shape=jax.ShapeDtypeStruct(x.shape, x.dtype),
        input_output_aliases={0: 0},
    )(x)


if __name__ == "__main__":
    key = jax.random.PRNGKey(0)
    # Small NCHW input consistent with a generic vision module.
    x = jax.random.normal(key, (2, 4, 16, 16), dtype=jnp.float32)
    x_np = np.asarray(x)  # snapshot before the (potentially aliased) call

    y = identity(x)
    jax.block_until_ready(y)
    assert y.shape == x_np.shape and y.dtype == x_np.dtype
    assert np.array_equal(np.asarray(y), x_np)

    # Also exercise the tiled, lane-dense path (> 2 MiB -> multi-step grid).
    big = jax.random.normal(jax.random.PRNGKey(1), (512, 2048), jnp.float32)
    big_np = np.asarray(big)
    yb = identity(big)
    jax.block_until_ready(yb)
    assert np.array_equal(np.asarray(yb), big_np)

    print("KERNEL_OK")
</pallas_src>

<mosaic_0001>
module attributes {stable_mosaic.version = 11 : i64} {
  func.func @_identity_kernel(%arg0: memref<1x2048xf32, #tpu.memory_space<vmem>>, %arg1: memref<1x2048xf32, #tpu.memory_space<vmem>>) attributes {dimension_semantics = [], scalar_prefetch = 0 : i64, scratch_operands = 0 : i64, tpu.core_type = #tpu.core_type<tc>} {
    %c0 = arith.constant 0 : index
    %c0_0 = arith.constant 0 : index
    %0 = vector.load %arg0[%c0, %c0_0] : memref<1x2048xf32, #tpu.memory_space<vmem>>, vector<1x2048xf32>
    %c0_1 = arith.constant 0 : index
    %c0_2 = arith.constant 0 : index
    %1 = vector.load %arg1[%c0_1, %c0_2] : memref<1x2048xf32, #tpu.memory_space<vmem>>, vector<1x2048xf32>
    tpu.vector_store %arg1[%c0_1, %c0_2], %0 {strides = array<i32>} : memref<1x2048xf32, #tpu.memory_space<vmem>>, vector<1x2048xf32>,
    return
  }
}

</mosaic_0001>

<bundles_post_ra>
// kernel: identity.1
= control target key start
LH: loop header
LB: loop body
LE: loop exit
PB: predicated region body
PF: predicated region fallthrough
CT: control target
= control target key end

     0   :  { %s38_s0 = inlined_call_operand.vmem [shape: f32[1,2048], index: 0, kind: input, shape index: {}, may-alias: {0,1}]   ;;  %s39_s1 = inlined_call_operand.vmem [shape: f32[1,2048], index: 1, kind: output, shape index: {}, may-alias: {0,1}]  }
   0x1   :  { %v8_v0 = vld [vmem:[%s38_s0] sm:$0xff]  ;;  %v9_v1 = vld [vmem:[%s38_s0 + $0x8] sm:$0xff] }
   0x2   :  { %10 = vst [vmem:[%s39_s1] sm:$0xff] %v8_v0  ;;  %11 = vst [vmem:[%s39_s1 + $0x8] sm:$0xff] %v9_v1 }

</bundles_post_ra>
